<compile_context>
chip_gen: v6e
topology: v6e:2x2x1
jax: 0.10.0
libtpu: 0.0.40
codegen_flags: <defaults>
</compile_context>

<pallas_src>
import functools
import math

import jax
import jax.numpy as jnp
from jax.experimental import pallas as pl
from jax.experimental.pallas import tpu as pltpu


# ----------------------------- VMEM budgeting -------------------------------

def _vmem_capacity_bytes():
    """Physical VMEM per TensorCore (128 MiB v5e/v6e, 64 MiB v7x)."""
    try:
        return int(pltpu.get_tpu_info().vmem_capacity_bytes)
    except Exception:
        return 64 * 1024 * 1024        # conservative fallback (v7x per-core)


def _vmem_limit_bytes():
    """Generation-aware scoped-VMEM request (<= 3/4 of physical, <= 96 MiB)."""
    return int(min(96 * 1024 * 1024, (_vmem_capacity_bytes() * 3) // 4))


def _block_byte_cap():
    """Per-array block target: ~1-4 MiB already reaches ~85% of the HBM
    roofline, and double-buffered x-in + x-out (~4x this) stays well below the
    scoped VMEM limit on every generation (incl. v7x's 64 MiB)."""
    return int(min(4 * 1024 * 1024, _vmem_limit_bytes() // 12))


def _sublane_unit(dtype):
    itemsize = jnp.dtype(dtype).itemsize
    return 8 if itemsize >= 4 else (16 if itemsize == 2 else 32)


def _row_tile(n_rows, row_bytes, sub_unit):
    """Largest sublane-aligned row tile that (a) fits the byte budget and
    (b) leaves at least two grid steps when there are enough rows (v7x)."""
    if n_rows <= sub_unit:
        return n_rows
    cap = max(sub_unit, _block_byte_cap() // max(1, row_bytes))
    half = max(sub_unit, ((n_rows // 2) // sub_unit) * sub_unit)
    tile = min(cap, half, n_rows)
    return max(sub_unit, (tile // sub_unit) * sub_unit)


# ----------------------------- Pallas kernels -------------------------------

def _ln_rows_kernel(x_ref, g_ref, b_ref, o_ref, *, eps, c):
    """channels_last, generic layout.  x_ref: (TILE_N, C).  Normalize each row
    over C (biased variance).  One-pass f32 statistics, rsqrt on the EUP."""
    x = x_ref[...].astype(jnp.float32)
    s1 = jnp.sum(x, axis=1, keepdims=True)
    s2 = jnp.sum(x * x, axis=1, keepdims=True)
    mean = s1 * (1.0 / c)
    var = jnp.maximum(s2 * (1.0 / c) - mean * mean, 0.0)
    inv = jax.lax.rsqrt(var + eps)
    g = g_ref[...].astype(jnp.float32)
    b = b_ref[...].astype(jnp.float32)
    o_ref[...] = ((x - mean) * inv * g + b).astype(o_ref.dtype)


def _ln_rows_grouped_kernel(x_ref, m_ref, g_ref, b_ref, o_ref, *, eps, c):
    """channels_last, small-C lane-dense layout.  x_ref: (TILE_R, G) where
    G = L*C is a multiple of 128 and every lane-row holds L independent rows of
    C contiguous features.  m_ref is a (G, G) block-diagonal ones matrix:
    x @ m broadcasts each group's sum to all of the group's lanes in a single
    MXU op, so the reduction, the normalization and the stores are all fully
    lane-dense (no masked vst.msk, no cross-lane XLU reduce)."""
    x = x_ref[...].astype(jnp.float32)
    m = m_ref[...]
    s1 = jnp.dot(x, m, preferred_element_type=jnp.float32)
    s2 = jnp.dot(x * x, m, preferred_element_type=jnp.float32)
    mean = s1 * (1.0 / c)
    var = jnp.maximum(s2 * (1.0 / c) - mean * mean, 0.0)
    inv = jax.lax.rsqrt(var + eps)
    g = g_ref[...].astype(jnp.float32)
    b = b_ref[...].astype(jnp.float32)
    o_ref[...] = ((x - mean) * inv * g + b).astype(o_ref.dtype)


def _ln_channels_first_kernel(x_ref, g_ref, b_ref, o_ref, *, eps, c):
    """channels_first.  x_ref: (TILE_B, C, TILE_S) -- channels on sublanes,
    flattened spatial on lanes (lane-dense, no transpose).  Normalize over the
    channel axis (biased variance, eps inside the sqrt), matching torch."""
    x = x_ref[...].astype(jnp.float32)
    s1 = jnp.sum(x, axis=1, keepdims=True)
    s2 = jnp.sum(x * x, axis=1, keepdims=True)
    mean = s1 * (1.0 / c)
    var = jnp.maximum(s2 * (1.0 / c) - mean * mean, 0.0)
    inv = jax.lax.rsqrt(var + eps)
    g = g_ref[...].astype(jnp.float32)
    b = b_ref[...].astype(jnp.float32)
    o_ref[...] = ((x - mean) * inv * g + b).astype(o_ref.dtype)


# ------------------------------- wrappers ------------------------------------

def layer_norm_channels_last(x, gamma, beta, eps=1e-6):
    """x: (..., C); F.layer_norm over the trailing C axis."""
    orig_shape = x.shape
    C = orig_shape[-1]
    N = math.prod(orig_shape[:-1])
    itemsize = jnp.dtype(x.dtype).itemsize
    sub_unit = _sublane_unit(x.dtype)
    vmem_limit = _vmem_limit_bytes()

    # ---- small-C lane-dense path: pack L = 128/C rows per lane-row ----------
    if C < 128 and 128 % C == 0 and N % (128 // C) == 0:
        L = 128 // C
        G = L * C                                  # == 128
        Np = N // L
        x2 = x.reshape(Np, G)                      # free (row-major) reshape
        grp = jnp.arange(G, dtype=jnp.int32) // C
        M = (grp[:, None] == grp[None, :]).astype(jnp.float32)  # block-diag ones
        g2 = jnp.tile(gamma.astype(jnp.float32).reshape(1, C), (1, L))
        b2 = jnp.tile(beta.astype(jnp.float32).reshape(1, C), (1, L))

        tile_r = _row_tile(Np, G * itemsize, sub_unit)
        grid = (pl.cdiv(Np, tile_r),)

        out = pl.pallas_call(
            functools.partial(_ln_rows_grouped_kernel, eps=eps, c=C),
            grid=grid,
            in_specs=[
                pl.BlockSpec((tile_r, G), lambda i: (i, 0)),
                pl.BlockSpec((G, G), lambda i: (0, 0)),
                pl.BlockSpec((1, G), lambda i: (0, 0)),
                pl.BlockSpec((1, G), lambda i: (0, 0)),
            ],
            out_specs=pl.BlockSpec((tile_r, G), lambda i: (i, 0)),
            out_shape=jax.ShapeDtypeStruct((Np, G), x.dtype),
            compiler_params=pltpu.CompilerParams(
                dimension_semantics=("parallel",),
                vmem_limit_bytes=vmem_limit),
        )(x2, M, g2, b2)
        return out.reshape(orig_shape)

    # ---- generic path (lane-dense whenever C is a multiple of 128) ----------
    x2 = x.reshape(N, C)
    tile_n = _row_tile(N, C * itemsize, sub_unit)
    grid = (pl.cdiv(N, tile_n),)

    out = pl.pallas_call(
        functools.partial(_ln_rows_kernel, eps=eps, c=C),
        grid=grid,
        in_specs=[
            pl.BlockSpec((tile_n, C), lambda i: (i, 0)),
            pl.BlockSpec((1, C), lambda i: (0, 0)),
            pl.BlockSpec((1, C), lambda i: (0, 0)),
        ],
        out_specs=pl.BlockSpec((tile_n, C), lambda i: (i, 0)),
        out_shape=jax.ShapeDtypeStruct((N, C), x.dtype),
        compiler_params=pltpu.CompilerParams(
            dimension_semantics=("parallel",),
            vmem_limit_bytes=vmem_limit),
    )(x2, gamma.reshape(1, C), beta.reshape(1, C))
    return out.reshape(orig_shape)


def layer_norm_channels_first(x, gamma, beta, eps=1e-6):
    """x: (B, C, H, W); normalize over C.  Works directly on the NCHW layout
    viewed as (B, C, H*W): no transpose, flattened spatial sits on the lanes
    and the channel reduction is a cheap sublane reduce."""
    B, C, H, W = x.shape
    S = H * W
    x3 = x.reshape(B, C, S)                        # free (row-major) reshape
    itemsize = jnp.dtype(x.dtype).itemsize
    lane_unit = 128
    block_cap = _block_byte_cap()
    vmem_limit = _vmem_limit_bytes()

    # lane-dense spatial tile: take the full spatial extent when it fits the
    # byte budget, otherwise the largest 128-multiple that does.
    max_tile_s = max(lane_unit, block_cap // max(1, C * itemsize))
    tile_s = S if S <= max_tile_s else (max_tile_s // lane_unit) * lane_unit

    # block several batch elements per step once the full spatial extent fits,
    # but keep >= 2 batch steps when B >= 2 (v7x megacore balance).
    tile_b = 1
    if tile_s == S and B > 1:
        cap_b = max(1, block_cap // max(1, C * S * itemsize))
        tile_b = max(1, min(B // 2, cap_b))

    # if B == 1 and the whole image fit in one block, split the spatial axis
    # so both v7x TensorCores get work.
    if B == 1 and pl.cdiv(S, tile_s) < 2 and S >= 2 * lane_unit:
        tile_s = max(lane_unit, ((S // 2) // lane_unit) * lane_unit)

    grid = (pl.cdiv(B, tile_b), pl.cdiv(S, tile_s))

    out = pl.pallas_call(
        functools.partial(_ln_channels_first_kernel, eps=eps, c=C),
        grid=grid,
        in_specs=[
            pl.BlockSpec((tile_b, C, tile_s), lambda b, s: (b, 0, s)),
            pl.BlockSpec((1, C, 1), lambda b, s: (0, 0, 0)),
            pl.BlockSpec((1, C, 1), lambda b, s: (0, 0, 0)),
        ],
        out_specs=pl.BlockSpec((tile_b, C, tile_s), lambda b, s: (b, 0, s)),
        out_shape=jax.ShapeDtypeStruct((B, C, S), x.dtype),
        compiler_params=pltpu.CompilerParams(
            dimension_semantics=("parallel", "parallel"),
            vmem_limit_bytes=vmem_limit),
    )(x3, gamma.reshape(1, C, 1), beta.reshape(1, C, 1))
    return out.reshape(B, C, H, W)


# ------------------------- pure-JAX references (check) -----------------------

def ref_channels_last(x, gamma, beta, eps=1e-6):
    u = x.mean(-1, keepdims=True)
    s = ((x - u) ** 2).mean(-1, keepdims=True)
    return (x - u) / jnp.sqrt(s + eps) * gamma + beta


def ref_channels_first(x, gamma, beta, eps=1e-6):
    u = x.mean(1, keepdims=True)
    s = ((x - u) ** 2).mean(1, keepdims=True)
    xn = (x - u) / jnp.sqrt(s + eps)
    return gamma[None, :, None, None] * xn + beta[None, :, None, None]


# --------------------------------- main ---------------------------------------

if __name__ == "__main__":
    key = jax.random.PRNGKey(0)
    k1, k2, k3, k4, k5, k6 = jax.random.split(key, 6)

    # channels_first: (B, C, H, W) with C = normalized_shape = 4.
    B, C, H, W = 2, 4, 16, 16
    gamma = 1.0 + 0.1 * jax.random.normal(k3, (C,), dtype=jnp.float32)
    beta = 0.1 * jax.random.normal(k4, (C,), dtype=jnp.float32)

    x_cf = jax.random.normal(k1, (B, C, H, W), dtype=jnp.float32)
    out_cf = jax.block_until_ready(layer_norm_channels_first(x_cf, gamma, beta))
    ref_cf = jax.block_until_ready(ref_channels_first(x_cf, gamma, beta))
    assert out_cf.shape == x_cf.shape
    assert bool(jnp.allclose(out_cf, ref_cf, atol=1e-5, rtol=1e-5))

    # channels_last, small C (exercises the lane-dense grouped path).
    x_cl = jax.random.normal(k2, (B, H, W, C), dtype=jnp.float32)
    out_cl = jax.block_until_ready(layer_norm_channels_last(x_cl, gamma, beta))
    ref_cl = jax.block_until_ready(ref_channels_last(x_cl, gamma, beta))
    assert out_cl.shape == x_cl.shape
    assert bool(jnp.allclose(out_cl, ref_cl, atol=1e-5, rtol=1e-5))

    # channels_last, C multiple of 128 (exercises the generic lane-dense path).
    C2 = 128
    gamma2 = 1.0 + 0.1 * jax.random.normal(k5, (C2,), dtype=jnp.float32)
    beta2 = 0.1 * jax.random.normal(k6, (C2,), dtype=jnp.float32)
    x_cl2 = jax.random.normal(k1, (2, 4, 4, C2), dtype=jnp.float32)
    out_cl2 = jax.block_until_ready(layer_norm_channels_last(x_cl2, gamma2, beta2))
    ref_cl2 = jax.block_until_ready(ref_channels_last(x_cl2, gamma2, beta2))
    assert out_cl2.shape == x_cl2.shape
    assert bool(jnp.allclose(out_cl2, ref_cl2, atol=1e-5, rtol=1e-5))

    print("KERNEL_OK")
</pallas_src>

<mosaic_0001>
module attributes {stable_mosaic.version = 11 : i64} {
  func.func @_ln_channels_first_kernel(%arg0: i32, %arg1: i32, %arg2: memref<1x4x256xf32, #tpu.memory_space<vmem>>, %arg3: memref<1x4x1xf32, #tpu.memory_space<vmem>>, %arg4: memref<1x4x1xf32, #tpu.memory_space<vmem>>, %arg5: memref<1x4x256xf32, #tpu.memory_space<vmem>>) attributes {dimension_semantics = [#tpu.dimension_semantics<parallel>, #tpu.dimension_semantics<parallel>], iteration_bounds = array<i64: 2, 1>, scalar_prefetch = 0 : i64, scratch_operands = 0 : i64, tpu.core_type = #tpu.core_type<tc>, window_params = [{transform_indices = @transform_0, window_bounds = array<i64: 1, 4, 256>}, {pipeline_mode = #tpu.pipeline_mode<synchronous>, transform_indices = @transform_1, window_bounds = array<i64: 1, 4, 1>}, {pipeline_mode = #tpu.pipeline_mode<synchronous>, transform_indices = @transform_2, window_bounds = array<i64: 1, 4, 1>}, {transform_indices = @transform_3, window_bounds = array<i64: 1, 4, 256>}]} {
    %c0 = arith.constant 0 : index
    %c0_0 = arith.constant 0 : index
    %c0_1 = arith.constant 0 : index
    %0 = vector.load %arg2[%c0, %c0_0, %c0_1] : memref<1x4x256xf32, #tpu.memory_space<vmem>>, vector<1x4x256xf32>
    %cst = arith.constant dense<0.000000e+00> : vector<1x256xf32>
    %1 = vector.multi_reduction <add>, %0, %cst [1] : vector<1x4x256xf32> to vector<1x256xf32>
    %2 = vector.shape_cast %1 : vector<1x256xf32> to vector<1x1x256xf32>
    %3 = arith.mulf %0, %0 : vector<1x4x256xf32>
    %cst_2 = arith.constant dense<0.000000e+00> : vector<1x256xf32>
    %4 = vector.multi_reduction <add>, %3, %cst_2 [1] : vector<1x4x256xf32> to vector<1x256xf32>
    %5 = vector.shape_cast %4 : vector<1x256xf32> to vector<1x1x256xf32>
    %cst_3 = arith.constant 2.500000e-01 : f32
    %6 = vector.broadcast %cst_3 : f32 to vector<1x1x256xf32>
    %7 = arith.mulf %2, %6 : vector<1x1x256xf32>
    %cst_4 = arith.constant 2.500000e-01 : f32
    %8 = vector.broadcast %cst_4 : f32 to vector<1x1x256xf32>
    %9 = arith.mulf %5, %8 : vector<1x1x256xf32>
    %10 = arith.mulf %7, %7 : vector<1x1x256xf32>
    %11 = arith.subf %9, %10 : vector<1x1x256xf32>
    %cst_5 = arith.constant 0.000000e+00 : f32
    %12 = vector.broadcast %cst_5 : f32 to vector<1x1x256xf32>
    %13 = arith.maximumf %11, %12 : vector<1x1x256xf32>
    %cst_6 = arith.constant 9.99999997E-7 : f32
    %14 = vector.broadcast %cst_6 : f32 to vector<1x1x256xf32>
    %15 = arith.addf %13, %14 : vector<1x1x256xf32>
    %16 = math.rsqrt %15 : vector<1x1x256xf32>
    %c0_7 = arith.constant 0 : index
    %c0_8 = arith.constant 0 : index
    %c0_9 = arith.constant 0 : index
    %17 = vector.load %arg3[%c0_7, %c0_8, %c0_9] : memref<1x4x1xf32, #tpu.memory_space<vmem>>, vector<1x4x1xf32>
    %c0_10 = arith.constant 0 : index
    %c0_11 = arith.constant 0 : index
    %c0_12 = arith.constant 0 : index
    %18 = vector.load %arg4[%c0_10, %c0_11, %c0_12] : memref<1x4x1xf32, #tpu.memory_space<vmem>>, vector<1x4x1xf32>
    %19 = vector.broadcast %7 : vector<1x1x256xf32> to vector<1x4x256xf32>
    %20 = arith.subf %0, %19 : vector<1x4x256xf32>
    %21 = vector.broadcast %16 : vector<1x1x256xf32> to vector<1x4x256xf32>
    %22 = arith.mulf %20, %21 : vector<1x4x256xf32>
    %23 = vector.broadcast %17 : vector<1x4x1xf32> to vector<1x4x256xf32>
    %24 = arith.mulf %22, %23 : vector<1x4x256xf32>
    %25 = vector.broadcast %18 : vector<1x4x1xf32> to vector<1x4x256xf32>
    %26 = arith.addf %24, %25 : vector<1x4x256xf32>
    %c0_13 = arith.constant 0 : index
    %c0_14 = arith.constant 0 : index
    %c0_15 = arith.constant 0 : index
    %27 = vector.load %arg5[%c0_13, %c0_14, %c0_15] : memref<1x4x256xf32, #tpu.memory_space<vmem>>, vector<1x4x256xf32>
    tpu.vector_store %arg5[%c0_13, %c0_14, %c0_15], %26 {strides = array<i32>} : memref<1x4x256xf32, #tpu.memory_space<vmem>>, vector<1x4x256xf32>,
    return
  }
  func.func @transform_0(%arg0: i32, %arg1: i32) -> (i32, i32, i32) {
    %c0_i32 = arith.constant 0 : i32
    %c0_i32_0 = arith.constant 0 : i32
    return %arg0, %c0_i32, %arg1 : i32, i32, i32
  }
  func.func @transform_1(%arg0: i32, %arg1: i32) -> (i32, i32, i32) {
    %c0_i32 = arith.constant 0 : i32
    %c0_i32_0 = arith.constant 0 : i32
    %c0_i32_1 = arith.constant 0 : i32
    %c0_i32_2 = arith.constant 0 : i32
    return %c0_i32, %c0_i32_0, %c0_i32_1 : i32, i32, i32
  }
  func.func @transform_2(%arg0: i32, %arg1: i32) -> (i32, i32, i32) {
    %c0_i32 = arith.constant 0 : i32
    %c0_i32_0 = arith.constant 0 : i32
    %c0_i32_1 = arith.constant 0 : i32
    %c0_i32_2 = arith.constant 0 : i32
    return %c0_i32, %c0_i32_0, %c0_i32_1 : i32, i32, i32
  }
  func.func @transform_3(%arg0: i32, %arg1: i32) -> (i32, i32, i32) {
    %c0_i32 = arith.constant 0 : i32
    %c0_i32_0 = arith.constant 0 : i32
    return %arg0, %c0_i32, %arg1 : i32, i32, i32
  }
}

</mosaic_0001>

<bundles_post_ra>
// kernel: tpu_custom_call.1
= control target key start
LH: loop header
LB: loop body
LE: loop exit
PB: predicated region body
PF: predicated region fallthrough
CT: control target
= control target key end

     0   :  { %8 = vsyncpa [#allocation3], 0  ;;  %s763_s0 = inlined_call_operand.hbm [shape: f32[2,4,256], index: 0, kind: input, shape index: {}]   ;;  %s764_s1 = inlined_call_operand.vmem [shape: f32[1,4,1], index: 1, kind: input, shape index: {}]   ;;  %s765_s2 = inlined_call_operand.vmem [shape: f32[1,4,1], index: 2, kind: input, shape index: {}]   ;;  %s766_s3 = inlined_call_operand.hbm [shape: f32[2,4,256], index: 3, kind: output, shape index: {}]  }
   0x1   :  { %10 = vsyncpa [#allocation3 + $0x1], 0 }
   0x2   :  { %11 = vsyncpa [#allocation4], 0 }
   0x3   :  { %13 = vsyncpa [#allocation4 + $0x1], 0  ;;  %s619_s12 = smov 0   ;;  %s621_s13 = smov 0  }
   0x4   :  { %s623_s14 = smov 0   ;;  %s625_s15 = smov 0  }
   0x5   :  { %s627_s16 = smov 0   ;;  %s629_s17 = smov 0  }
   0x6 LB: > { %s398_s18 = sadd.s32 4294967295, %s593_s17   ;;  %s399_s19 = sadd.s32 4294967294, %s593_s17   ;;  %s593_s17 = sphi %s629_s17, %s19_s17   ;;  %s589_s16 = sphi %s627_s16, %s778_s16   ;;  %s585_s15 = sphi %s625_s15, %s777_s15   ;;  %s581_s14 = sphi %s623_s14, %s776_s14   ;;  %s577_s13 = sphi %s621_s13, %s775_s13   ;;  %s573_s12 = sphi %s619_s12, %s774_s12  }
   0x7   : > { %s31_s20 = sadd.s32 1, %s589_s16  ;;  %s40_s21 = sadd.s32 1, %s581_s14 }
   0x8   : > { %p33_p0 = scmp.ge.s32.totalorder %s31_s20, 2  ;;  %p47_p1 = scmp.ne.s32.totalorder %s581_s14, %s577_s13 }
   0x9   : > { %p48_p2 = scmp.eq.s32.totalorder %s593_s17, 0  ;;  %p53_p3 = scmp.ne.s32.totalorder %s577_s13, %s573_s12 }
   0xa   : > { %s780_s20 = smov (%p33_p0, %s31_s20), 0  ;;  %p54_p5 = scmp.eq.s32.totalorder %s398_s18, 0 }
   0xb   : > { %p660_p4 = por %p48_p2, %p47_p1  ;;  %s35_s23 = ssub.s32 %s589_s16, %s780_s20 }
   0xc   : > { %p121_p6 = scmp.eq.s32.totalorder %s398_s18, 1  ;;  %p38_p7 = scmp.eq.s32.totalorder %s35_s23, 0 }
   0xd   : > { %p666_p8 = por %p54_p5, %p53_p3  ;;  %p127_p10 = scmp.eq.s32.totalorder %s399_s19, 1 }
   0xe   : > { %p670_p9 = por %p121_p6, %p47_p1  ;;  %p427_p13 = scmp.lt.s32.totalorder %s593_s17, 2 }
   0xf   : > { %s675_s26 = scalar_select %p38_p7, %s581_s14, %s40_s21  }
  0x10   : > { %p677_p11 = por %p127_p10, %p53_p3  ;;  %s153_s28 = sand.u32 1, %s581_s14  }
  0x11   : > { %s402_s29 = sshll.u32 %s153_s28, 3  ;;  %s413_s30 = sshll.u32 %s589_s16, 7 }
  0x12   : > { %s770_s27 = scalar_select %p677_p11, 1, 0 }
  0x13   : > { %s165_s6 = scalar_lea.hbm %s763_s0, %s413_s30  ;;  %s157_s7 = scalar_lea.vmem [#allocation2], %s402_s29 }
  0x14   : > { %s167_s8 = sshll.u32 %s157_s7, 4  ;;  %p690_p0 = pnand %p427_p13, %p660_p4  ;;  %s168_s8 = int_to_ptr.vmem [resolvable:$true] %s167_s8 }
  0x15   : > { %p405_p1 = scmp.ge.s32.totalorder %s593_s17, 1  ;;  %p172_p2 = scmp.lt.s32.totalorder %s593_s17, 3 }
  0x16   : > { %s154_s10 = scalar_lea.sflag [#allocation3], %s153_s28  ;;  %p487_p3 = pneg %p690_p0 }
  0x17   : > { %s498_s11 = scalar_lea.vmem %s168_s8, 128  ;;  %s595_s18 = smov [#allocation2]  }
  0x18   : > { %p499_p5 = scmp.ne.s32.totalorder %s168_s8, %s498_s11  ;;  %s503_s19 = sshll.u32 %s595_s18, 4  ;;  %s504_s19 = int_to_ptr.vmem [resolvable:$false] %s503_s19 }
  0x19   : > { %s505_s21 = scalar_lea.vmem %s504_s19, 256  ;;  %p506_p10 = scmp.lt.s32.totalorder %s168_s8, %s504_s19 }
  0x1a   : > { %p501_p6 = pnand %p499_p5, %p487_p3  ;;  %p507_p12 = scmp.lt.s32.totalorder %s505_s21, %s498_s11 }
  0x1c   : > { %p502_p7 = pneg %p501_p6  ;;  %p508_p4 = por %p507_p12, %p506_p10 }
  0x1e   : > { %p509_p13 = pnand %p508_p4, %p502_p7 }
  0x20   : > { %512 = shalt.err (!%p509_p13)
}
  0x21   : > { %422 = dma.hbm_to_vmem [thread:$0]  (!%p690_p0), %s165_s6, 128, %s168_s8, %s154_s10  }
  0x22   : > { %p173_p11 = pnand %p405_p1, %p172_p2 }
  0x23   : > { %s705_s22 = sand.u32 (!%p173_p11), 1, %s577_s13  }
  0x24   : > { %176 = sbr.rel (%p173_p11) target bundleno = 189 (0xbd), region = 32  ;;  %s406_s23 = sshll.u32 (!%p173_p11), %s705_s22, 3 }
  0x25   : > { %s179_s28 = scalar_lea.sflag (!%p173_p11), [#allocation3], %s705_s22  ;;  %s182_s29 = scalar_lea.vmem (!%p173_p11), [#allocation2], %s406_s23 }
  0x29   : > { %564 = dma.done.wait (%p666_p8), %s179_s28, 128  }
  0x2a   : > { %566 = vsyncadd (%p666_p8), %s179_s28, 4294967168  ;;  %v596_v0 = vmov 0   ;;  %v258_v1 = vld [vmem:[%s764_s1] sm:$0xf]  ;;  %vm211_vm0 = vcmask 1043456   ;;  %v277_v49 = vlaneseq  ;;  %s414_s24 = sshll.u32 %s585_s15, 7 }
  0x2b   : > { %479 = vset.pattern.permute.xlu0 %v596_v0  ;;  %v259_v2 = vld [vmem:[%s765_s2] sm:$0xf]  ;;  %v597_v47 = vmov 839922192   ;;  %s204_s7 = scalar_lea.vmem [#allocation5], %s406_s23  ;;  %s312_s11 = scalar_lea.hbm %s766_s3, %s414_s24 }
  0x2c   : > { %272 = vperm.xlu0 %479, %v258_v1   ;;  %v207_v3 = vld [vmem:[%s182_s29] sm:$0xff]  ;;  %v275_v48 = vunpack.c.l.s4 %v597_v47  ;;  %v278_v52 = vshrl.u32 %v277_v49, 7  ;;  %s314_s8 = sshll.u32 %s204_s7, 4  ;;  %s298_s18 = scalar_lea.sflag [#allocation4], %s705_s22  ;;  %s315_s8 = int_to_ptr.vmem [resolvable:$true] %s314_s8 }
  0x2d   : > { %v209_v4 = vcombine.high %v207_v3, %v207_v3  ;;  %v226_v5 = vmul.f32 %v207_v3, %v207_v3  ;;  %v212_v6 = vsel %vm211_vm0, %v207_v3, 0.0  ;;  %s513_s19 = scalar_lea.vmem %s315_s8, 128  ;;  %s598_s21 = smov [#allocation5]  }
  0x2e   : > { %v213_v9 = vrot.slane %v212_v6, 4  ;;  %v276_v51 = vunpack.c.0.s8 %v275_v48  ;;  %p514_p8 = scmp.ne.s32.totalorder %s315_s8, %s513_s19  ;;  %s517_s15 = sshll.u32 %s598_s21, 4  ;;  %s518_s15 = int_to_ptr.vmem [resolvable:$false] %s517_s15 }
  0x2f   : > { %v219_v7 = vsel %vm211_vm0, %v209_v4, 0.0  ;;  %v228_v8 = vcombine.high %v226_v5, %v226_v5  ;;  %v230_v11 = vsel %vm211_vm0, %v226_v5, 0.0  ;;  %s519_s23 = scalar_lea.vmem %s518_s15, 256  ;;  %p520_p0 = scmp.lt.s32.totalorder %s315_s8, %s518_s15 }
  0x30   : > { %285 = vperm.xlu0 %479, %v259_v2   ;;  %v220_v10 = vrot.slane %v219_v7, 4  ;;  %v214_v13 = vadd.f32 %v213_v9, %v212_v6  ;;  %v231_v14 = vrot.slane %v230_v11, 4  ;;  %v279_v55 = vsub.s32 %v276_v51, %v278_v52  ;;  %p515_p11 = pnand %p514_p8, %p670_p9  ;;  %p521_p1 = scmp.lt.s32.totalorder %s519_s23, %s513_s19 }
  0x31   : > { %v237_v12 = vsel %vm211_vm0, %v228_v8, 0.0 }
  0x32   : > { %v221_v15 = vadd.f32 %v220_v10, %v219_v7  ;;  %v238_v16 = vrot.slane %v237_v12, 4  ;;  %v215_v17 = vrot.slane %v214_v13, 2  ;;  %v232_v18 = vadd.f32 %v231_v14, %v230_v11  ;;  %p516_p12 = pneg %p515_p11  ;;  %p522_p2 = por %p521_p1, %p520_p0 }
  0x34   : > { %v222_v19 = vrot.slane %v221_v15, 2  ;;  %v239_v20 = vadd.f32 %v238_v16, %v237_v12  ;;  %v216_v21 = vadd.f32 %v215_v17, %v214_v13  ;;  %v233_v22 = vrot.slane %v232_v18, 2  ;;  %p523_p3 = pnand %p522_p2, %p516_p12 }
  0x36   : > { %v223_v23 = vadd.f32 %v222_v19, %v221_v15  ;;  %v240_v24 = vrot.slane %v239_v20, 2  ;;  %v217_v25 = vrot.slane %v216_v21, 1  ;;  %v234_v26 = vadd.f32 %v233_v22, %v232_v18 }
  0x38   : > { %v224_v27 = vrot.slane %v223_v23, 1  ;;  %v241_v28 = vadd.f32 %v240_v24, %v239_v20  ;;  %v218_v29 = vadd.f32 %v217_v25, %v216_v21  ;;  %v235_v30 = vrot.slane %v234_v26, 1 }
  0x3a   : > { %v225_v31 = vadd.f32 %v224_v27, %v223_v23  ;;  %v242_v32 = vrot.slane %v241_v28, 1  ;;  %v236_v33 = vadd.f32 %v235_v30, %v234_v26  ;;  %v244_v34 = vmul.f32 0.25, %v218_v29 }
  0x3c   : > { %v243_v35 = vadd.f32 %v242_v32, %v241_v28  ;;  %v245_v36 = vmul.f32 0.25, %v225_v31  ;;  %v246_v37 = vmul.f32 0.25, %v236_v33  ;;  %v248_v38 = vmul.f32 %v244_v34, %v244_v34 }
  0x3e   : > { %v247_v39 = vmul.f32 0.25, %v243_v35  ;;  %v249_v40 = vmul.f32 %v245_v36, %v245_v36  ;;  %v250_v41 = vsub.f32 %v246_v37, %v248_v38  ;;  %v262_v53 = vcombine.low %v244_v34, %v245_v36 }
  0x40   : > { %v251_v42 = vsub.f32 %v247_v39, %v249_v40  ;;  %v252_v43 = vmax.f32 %v250_v41, 0.0  ;;  %v264_v56 = vsub.f32 %v207_v3, %v262_v53 }
  0x42   : > { %v253_v44 = vmax.f32 %v251_v42, 0.0  ;;  %v254_v45 = vadd.f32 1e-06, %v252_v43 }
  0x44   : > { %v255_v46 = vadd.f32 1e-06, %v253_v44  ;;  %481 = vrsqrt.f32 %v254_v45 }
  0x46   : > { %483 = vrsqrt.f32 %v255_v46 }
  0x51   : > { %v482_v50 = vpop.eup %481 }
  0x53   : > { %v484_v54 = vpop.eup %483 }
  0x54   : > { %v267_v57 = vcombine.low %v482_v50, %v484_v54 }
  0x56   : > { %v269_v59 = vmul.f32 %v267_v57, %v264_v56 }
  0xa7   : > { %v273_v58 = vpop.permute.xlu0 %272 }
  0xa8   : > { %v280_v60 = vrot.slane %v273_v58, %v279_v55 }
  0xaa   : > { %v282_v62 = vmul.f32 %v280_v60, %v269_v59 }
  0xab   : > { %v286_v61 = vpop.permute.xlu0 %285 }
  0xac   : > { %v293_v63 = vrot.slane %v286_v61, %v279_v55 }
  0xae   : > { %v295_v0 = vadd.f32 %v293_v63, %v282_v62 }
  0xb0   : > { %296 = vst [vmem:[%s204_s7] sm:$0xff] %v295_v0 }
  0xb1   : > { %526 = shalt.err (!%p523_p3)
}
  0xb2   : > { %s527_s28 = scalar_lea.hbm %s312_s11, 128  ;;  %s531_s30 = scalar_lea.hbm %s766_s3, 256 }
  0xb3   : > { %p528_p5 = scmp.ne.s32.totalorder %s312_s11, %s527_s28  ;;  %p532_p10 = scmp.lt.s32.totalorder %s312_s11, %s766_s3 }
  0xb4   : > { %p533_p4 = scmp.lt.s32.totalorder %s531_s30, %s527_s28 }
  0xb5   : > { %p529_p6 = pnand %p528_p5, %p670_p9 }
  0xb6   : > { %p534_p13 = por %p533_p4, %p532_p10 }
  0xb7   : > { %p530_p7 = pneg %p529_p6 }
  0xb9   : > { %p535_p8 = pnand %p534_p13, %p530_p7 }
  0xbb   : > { %538 = shalt.err (!%p535_p8)
}
  0xbc   : > { %417 = dma.vmem_to_hbm [thread:$0]  (%p670_p9), %s315_s8, 128, %s312_s11, %s298_s18  }
  0xbd PF: > { %s326_s6 = sand.u32 1, %s573_s12   ;;  %p772_p11 = scmp.ne.s32.totalorder %s770_s27, 0 }
  0xbe   : > { %p773_p12 = scmp.ge.s32.totalorder %s593_s17, 2  ;;  %s327_s24 = scalar_lea.sflag [#allocation4], %s326_s6 }
  0xc0   : > { %p424_p0 = pnand %p773_p12, %p772_p11 }
  0xc2   : > { %p425_p1 = pneg %p424_p0 }
  0xc4   : > { %568 = dma.done.wait (%p425_p1), %s327_s24, 128  }
  0xc5   : > { %570 = vsyncadd (%p425_p1), %s327_s24, 4294967168  ;;  %s19_s17 = sadd.s32 1, %s593_s17   ;;  %s774_s12 = smov %s577_s13 }
  0xc6   : > { %p16_p2 = scmp.ge.s32.totalorder %s19_s17, 4   ;;  %s775_s13 = smov %s581_s14 }
  0xc7   : > { %s776_s14 = smov %s675_s26  ;;  %s777_s15 = smov %s589_s16 }
  0xc8   : > { %s778_s16 = smov %s780_s20  ;;  %18 = sbr.rel (!%p16_p2) target bundleno = 6 (0x6), region = 77 }
  0xcd   :  { %332 = vsyncpa [#allocation3], 1 }
  0xce   :  { %334 = vsyncpa [#allocation3 + $0x1], 1 }
  0xcf   :  { %335 = vsyncpa [#allocation4], 1 }
  0xd0   :  { %337 = vsyncpa [#allocation4 + $0x1], 1 }

</bundles_post_ra>
